<compile_context>
chip_gen: v7x
topology: tpu7x:2x2x1
jax: 0.10.0
libtpu: 0.0.40
codegen_flags: <defaults>
</compile_context>

<pallas_src>
import jax
import jax.numpy as jnp
from jax.experimental import pallas as pl
from jax.experimental.pallas import tpu as pltpu


_SMALL_BYTES = 2 << 20  # below this: single whole-array block, no grid


def _copy_kernel(x_ref, o_ref):
    # Whole-tile load + single unmasked full-tile store.
    o_ref[...] = x_ref[...]


def _to_lane_dense_2d(x: jax.Array) -> jax.Array:
    """Flatten to a 2D slab with a lane-dense (multiple-of-128) last dim when possible."""
    total = x.size
    if total % 128 == 0 and total > 0:
        return x.reshape(-1, 128)
    if x.ndim >= 2:
        return x.reshape(-1, x.shape[-1])
    return x.reshape(1, -1)


def _choose_block_rows(rows: int, cols: int, itemsize: int) -> int:
    """Largest row tile that (a) divides `rows`, (b) keeps the tile <= ~4 MiB so
    double-buffered in+out stays well inside v7x's scoped VMEM, (c) prefers a
    multiple of 8 sublanes, (d) leaves >= 2 grid steps for v7x's two TensorCores."""
    max_tile_bytes = 4 << 20
    cap = max(1, max_tile_bytes // max(1, cols * itemsize))
    cap = min(cap, rows)
    if rows >= 16:
        cap = min(cap, rows // 2)  # keep >= 2 grid steps for megacore sharding

    divs = set()
    d = 1
    while d * d <= rows:
        if rows % d == 0:
            divs.add(d)
            divs.add(rows // d)
        d += 1
    cands = [v for v in divs if v <= cap]
    if not cands:
        return rows
    mult8 = [v for v in cands if v % 8 == 0]
    return max(mult8) if mult8 else max(cands)


def _pallas_copy_2d(x2: jax.Array) -> jax.Array:
    rows, cols = x2.shape
    nbytes = rows * cols * x2.dtype.itemsize

    if nbytes <= _SMALL_BYTES:
        # Single whole-array VMEM block, no grid: minimal-overhead form.
        return pl.pallas_call(
            _copy_kernel,
            out_shape=jax.ShapeDtypeStruct((rows, cols), x2.dtype),
            input_output_aliases={0: 0},
        )(x2)

    block_rows = _choose_block_rows(rows, cols, x2.dtype.itemsize)
    grid = (rows // block_rows,)
    return pl.pallas_call(
        _copy_kernel,
        out_shape=jax.ShapeDtypeStruct((rows, cols), x2.dtype),
        grid=grid,
        in_specs=[pl.BlockSpec((block_rows, cols), lambda i: (i, 0))],
        out_specs=pl.BlockSpec((block_rows, cols), lambda i: (i, 0)),
        input_output_aliases={0: 0},
        compiler_params=pltpu.CompilerParams(
            dimension_semantics=("parallel",),
            vmem_limit_bytes=32 << 20,
        ),
    )(x2)


def dummy_model_forward(x: jax.Array, *, run_kernel: bool = True) -> jax.Array:
    """Identity forward pass of DummyModel.

    For a pure identity the optimal implementation is to return `x` unchanged
    (run_kernel=False). With run_kernel=True (default, used by the demo) the
    copy is executed as a lane-dense Pallas TPU kernel.
    """
    if not run_kernel or x.size == 0:
        return x

    orig_shape = x.shape
    x2 = _to_lane_dense_2d(x)
    out = _pallas_copy_2d(x2)
    return out.reshape(orig_shape)


def dummy_model_test_step(x: jax.Array) -> jax.Array:
    # Mirrors DummyModel.test_step -> forward(x)
    return dummy_model_forward(x)


if __name__ == "__main__":
    key = jax.random.PRNGKey(0)
    # NCHW example input, small shapes: batch=2, channels=4, spatial=16x16.
    x = jax.random.normal(key, (2, 4, 16, 16), dtype=jnp.float32)

    y = dummy_model_test_step(x)
    y = jax.block_until_ready(y)

    assert y.shape == x.shape
    assert y.dtype == x.dtype
    assert bool(jnp.all(y == x))

    print("KERNEL_OK")
</pallas_src>

<mosaic_0001>
module attributes {stable_mosaic.version = 11 : i64} {
  func.func @_copy_kernel(%arg0: memref<16x128xf32, #tpu.memory_space<vmem>>, %arg1: memref<16x128xf32, #tpu.memory_space<vmem>>) attributes {dimension_semantics = [], scalar_prefetch = 0 : i64, scratch_operands = 0 : i64, tpu.core_type = #tpu.core_type<tc>} {
    %c0 = arith.constant 0 : index
    %c0_0 = arith.constant 0 : index
    %0 = vector.load %arg0[%c0, %c0_0] : memref<16x128xf32, #tpu.memory_space<vmem>>, vector<16x128xf32>
    %c0_1 = arith.constant 0 : index
    %c0_2 = arith.constant 0 : index
    %1 = vector.load %arg1[%c0_1, %c0_2] : memref<16x128xf32, #tpu.memory_space<vmem>>, vector<16x128xf32>
    tpu.vector_store %arg1[%c0_1, %c0_2], %0 {strides = array<i32>} : memref<16x128xf32, #tpu.memory_space<vmem>>, vector<16x128xf32>,
    return
  }
}

</mosaic_0001>

<bundles_post_ra>
// kernel: tpu_custom_call.1
= control target key start
LH: loop header
LB: loop body
LE: loop exit
PB: predicated region body
PF: predicated region fallthrough
CT: control target
= control target key end

     0   :  { %6 = vsyncpa [#allocation3], 0  ;;  %s134_s0 = inlined_call_operand.hbm [shape: f32[16,128], index: 0, kind: input, shape index: {}, may-alias: {0,1}]   ;;  %s135_s1 = inlined_call_operand.hbm [shape: f32[16,128], index: 1, kind: output, shape index: {}, may-alias: {0,1}]  }
   0x1   :  { %7 = vsyncpa [#allocation4], 0  ;;  %s96_s6 = smov [#allocation2]   ;;  %s48_s10 = scalar_lea.hbm %s134_s0, 256 }
   0x2   :  { %s13_s7 = sshll.u32 %s96_s6, 4  ;;  %p49_p0 = scmp.ne.s32.totalorder %s134_s0, %s48_s10  ;;  %s14_s7 = int_to_ptr.vmem [resolvable:$true] %s13_s7 }
   0x3   :  { %p52_p1 = scmp.lt.u32.totalorder %s48_s10, %s134_s0 }
   0x5   :  { %p54_p2 = pnand %p52_p1, %p49_p0 }
   0x7   :  { %57 = shalt.err (!%p54_p2)
}
   0x8   :  { %s58_s15 = scalar_lea.vmem %s14_s7, 256  ;;  %p63_p4 = scmp.lt.s32.totalorder %s14_s7, %s14_s7 }
   0x9   :  { %p59_p3 = scmp.ne.s32.totalorder %s14_s7, %s58_s15  ;;  %p64_p5 = scmp.lt.s32.totalorder %s58_s15, %s58_s15 }
   0xb   :  { %p65_p6 = por %p64_p5, %p63_p4 }
   0xd   :  { %p66_p7 = pnand %p65_p6, %p59_p3 }
   0xf   :  { %69 = shalt.err (!%p66_p7)
}
  0x10   :  { %s97_s16 = smov 128   ;;  %s98_s17 = smov 8  }
  0x11   :  { %19 = dma.hbm_to_vmem [thread:$0]  %s134_s0, 256, %s14_s7, [#allocation3], %s97_s16, %s97_s16, %s98_s17  }
  0x12   :  { %92 = dma.done.wait [#allocation3], 256  }
  0x13   :  { %93 = vsyncadd [#allocation3], 4294967040  ;;  %s99_s20 = smov [#allocation5]   ;;  %v23_v0 = vld [vmem:[#allocation2] sm:$0xff]  ;;  %v24_v1 = vld [vmem:[#allocation2 + $0x8] sm:$0xff] }
  0x14   :  { %s32_s21 = sshll.u32 %s99_s20, 4  ;;  %25 = vst [vmem:[#allocation5] sm:$0xff] %v23_v0  ;;  %26 = vst [vmem:[#allocation5 + $0x8] sm:$0xff] %v24_v1  ;;  %s33_s21 = int_to_ptr.vmem [resolvable:$true] %s32_s21 }
  0x15   :  { %s70_s22 = scalar_lea.vmem %s33_s21, 256  ;;  %p75_p9 = scmp.lt.s32.totalorder %s33_s21, %s33_s21 }
  0x16   :  { %p71_p8 = scmp.ne.s32.totalorder %s33_s21, %s70_s22  ;;  %p76_p10 = scmp.lt.s32.totalorder %s70_s22, %s70_s22 }
  0x18   :  { %p77_p11 = por %p76_p10, %p75_p9 }
  0x1a   :  { %p78_p12 = pnand %p77_p11, %p71_p8 }
  0x1c   :  { %81 = shalt.err (!%p78_p12)
}
  0x1d   :  { %s82_s0 = scalar_lea.hbm %s135_s1, 256 }
  0x1e   :  { %p83_p13 = scmp.ne.s32.totalorder %s135_s1, %s82_s0  ;;  %p86_p0 = scmp.lt.u32.totalorder %s82_s0, %s135_s1 }
  0x20   :  { %p88_p1 = pnand %p86_p0, %p83_p13 }
  0x22   :  { %91 = shalt.err (!%p88_p1)
}
  0x23   :  { %38 = dma.vmem_to_hbm [thread:$0]  %s33_s21, 256, %s135_s1, [#allocation4], %s97_s16, %s97_s16, %s98_s17  }
  0x24   :  { %94 = dma.done.wait [#allocation4], 256  }
  0x25   :  { %95 = vsyncadd [#allocation4], 4294967040 }
  0x26   :  { %42 = vsyncpa [#allocation3], 1 }
  0x27   :  { %43 = vsyncpa [#allocation4], 1 }

</bundles_post_ra>
